<compile_context>
chip_gen: v7x
topology: tpu7x:2x2x1
jax: 0.10.0
libtpu: 0.0.40
codegen_flags: <defaults>
</compile_context>

<pallas_src>
import jax
import jax.numpy as jnp
from jax.experimental import pallas as pl
from jax.experimental.pallas import tpu as pltpu


_TARGET_TILE_BYTES = 2 * 1024 * 1024   # ~2 MiB per buffer (good on v5e/v6e/v7x)
_MAX_TILE_D = 1024
_MAX_TILE_L = 4096
_SMALL_TOTAL_BYTES = 512 * 1024        # below this, skip tiling entirely


def _pos_embed_tile_kernel(x_ref, pe_ref, o_ref):
    # x_ref / o_ref: (t_l, t_d) tile of the current batch element (batch squeezed).
    # pe_ref: matching (t_l, t_d) tile of the positional table (shared across b).
    o_ref[...] = x_ref[...].astype(o_ref.dtype) + pe_ref[...].astype(o_ref.dtype)


def _pos_embed_whole_kernel(x_ref, pe_ref, o_ref):
    # Tiny-problem path: whole arrays resident in VMEM, single step.
    o_ref[...] = (x_ref[...].astype(o_ref.dtype)
                  + pe_ref[...].astype(o_ref.dtype)[None, :, :])


def _round_up(n, q):
    return -(-n // q) * q


def _sublane_quantum(*dtypes):
    # Sub-32-bit dtypes pack 2/4 rows per sublane word: 8 (f32), 16 (bf16), 32 (i8).
    min_isz = min(jnp.dtype(d).itemsize for d in dtypes)
    return max(8, 32 // min_isz)


def _pick_tile_d(D):
    if D % 128 != 0:
        # A last block dim equal to the full array dim is always legal; only cost is
        # a partially-masked final vreg per row.
        return D
    if D <= _MAX_TILE_D:
        return D
    # Prefer a 128-multiple divisor (no ragged lane block); else accept cdiv masking.
    for t in range(_MAX_TILE_D, 127, -128):
        if D % t == 0:
            return t
    return _MAX_TILE_D


def _pick_tile_l(L, t_d, max_itemsize, q):
    t = (_TARGET_TILE_BYTES // max(1, t_d * max_itemsize)) // q * q
    t = max(q, min(t, _MAX_TILE_L))
    return min(t, _round_up(L, q))


def position_embedding(x, pe_weight, *, tile_l=None, tile_d=None,
                       small_bytes=_SMALL_TOTAL_BYTES):
    """x: (B, L, D); pe_weight: (max_len, D). Returns x + pe_weight[:L][None]."""
    B, L, D = x.shape
    max_len, Dw = pe_weight.shape
    assert Dw == D, "pe table width must match model dim"
    assert L <= max_len, "sequence length exceeds positional table"

    out_dtype = jnp.promote_types(x.dtype, pe_weight.dtype)  # match torch promotion
    out_shape = jax.ShapeDtypeStruct((B, L, D), out_dtype)
    x_isz = jnp.dtype(x.dtype).itemsize
    pe_isz = jnp.dtype(pe_weight.dtype).itemsize
    out_isz = jnp.dtype(out_dtype).itemsize

    cost = pl.CostEstimate(
        flops=B * L * D,
        transcendentals=0,
        bytes_accessed=B * L * D * (x_isz + out_isz) + L * D * pe_isz,
    )

    # Tiny problems: one whole-array call; grid steps would be pure overhead.
    if B * L * D * out_isz <= small_bytes:
        return pl.pallas_call(
            _pos_embed_whole_kernel,
            out_shape=out_shape,
            in_specs=[pl.BlockSpec(memory_space=pltpu.MemorySpace.VMEM),
                      pl.BlockSpec(memory_space=pltpu.MemorySpace.VMEM)],
            out_specs=pl.BlockSpec(memory_space=pltpu.MemorySpace.VMEM),
            cost_estimate=cost,
        )(x, pe_weight[:L])

    q = _sublane_quantum(x.dtype, pe_weight.dtype, out_dtype)
    max_isz = max(x_isz, pe_isz, out_isz)
    t_d = tile_d if tile_d is not None else _pick_tile_d(D)
    t_l = tile_l if tile_l is not None else _pick_tile_l(L, t_d, max_isz, q)

    n_l = pl.cdiv(L, t_l)
    n_d = pl.cdiv(D, t_d)
    # B innermost (fastest-varying): pe's block index is constant across it, so the
    # pe input DMA is skipped on consecutive steps.
    grid = (n_l, n_d, B)

    # The l-th pe block spans rows [l*t_l, (l+1)*t_l). If all those rows exist in
    # the table, pass the full table (no HBM copy); otherwise slice to [:L] and let
    # Pallas mask the ragged last block (its rows never reach the output anyway).
    pe_in = pe_weight if n_l * t_l <= max_len else pe_weight[:L]

    # Alias x -> out when shapes/dtypes match (benefit realized if caller donates x).
    aliases = {0: 0} if jnp.dtype(out_dtype) == jnp.dtype(x.dtype) else {}

    return pl.pallas_call(
        _pos_embed_tile_kernel,
        out_shape=out_shape,
        grid_spec=pltpu.PrefetchScalarGridSpec(
            num_scalar_prefetch=0,
            grid=grid,
            in_specs=[
                # x: per-(l, d, b) tile, batch dim squeezed out of the kernel ref.
                pl.BlockSpec((None, t_l, t_d), lambda l, d, b: (b, l, d)),
                # pe: shared across batch; block index independent of innermost b.
                pl.BlockSpec((t_l, t_d), lambda l, d, b: (l, d)),
            ],
            out_specs=pl.BlockSpec((None, t_l, t_d), lambda l, d, b: (b, l, d)),
        ),
        compiler_params=pltpu.CompilerParams(
            # "arbitrary" on b keeps any megacore split on the l/d axes (v7x),
            # preserving the per-core pe-DMA-skip; no-op on v5e/v6e.
            dimension_semantics=("parallel", "parallel", "arbitrary"),
            vmem_limit_bytes=32 * 1024 * 1024,
        ),
        cost_estimate=cost,
        input_output_aliases=aliases,
    )(x, pe_in)


if __name__ == "__main__":
    key = jax.random.PRNGKey(0)
    ks = jax.random.split(key, 8)

    def make(kx, kp, B, L, D, max_len, x_dtype=jnp.float32):
        x = jax.random.normal(kx, (B, L, D), dtype=jnp.float32).astype(x_dtype)
        # nn.init.uniform_(pe.weight, -0.1, 0.1) equivalent, deterministic:
        pe = jax.random.uniform(kp, (max_len, D), dtype=jnp.float32,
                                minval=-0.1, maxval=0.1)
        return x, pe

    def ref_fn(x, pe):
        od = jnp.promote_types(x.dtype, pe.dtype)
        L = x.shape[1]
        return x.astype(od) + pe[:L].astype(od)[None, :, :]

    # Case 1: module's toy shapes (d_model=32, max_len=16, B=2, L=8) -> tiny path.
    x, pe = make(ks[0], ks[1], 2, 8, 32, 16)
    ref = ref_fn(x, pe)
    out = jax.block_until_ready(position_embedding(x, pe))
    assert out.shape == ref.shape and out.dtype == ref.dtype
    assert jnp.allclose(out, ref, atol=1e-6), "case 1 mismatch"

    # Case 2: tiled path, D % 128 == 0 (bypass disabled via small_bytes=0).
    x, pe = make(ks[2], ks[3], 2, 40, 256, 64)
    ref = ref_fn(x, pe)
    out = jax.block_until_ready(position_embedding(x, pe, small_bytes=0))
    assert jnp.allclose(out, ref, atol=1e-6), "case 2 mismatch"

    # Case 3: tiled path, D not a multiple of 128, ragged last L block,
    #         pe sliced because ceil(L/t_l)*t_l > max_len.
    x, pe = make(ks[4], ks[5], 2, 20, 96, 20)
    ref = ref_fn(x, pe)
    out = jax.block_until_ready(position_embedding(x, pe, tile_l=8, small_bytes=0))
    assert jnp.allclose(out, ref, atol=1e-6), "case 3 mismatch"

    # Case 4: mixed dtype (bf16 x + f32 pe) -> f32 output, no aliasing.
    x, pe = make(ks[6], ks[7], 2, 24, 128, 32, x_dtype=jnp.bfloat16)
    ref = ref_fn(x, pe)
    out = jax.block_until_ready(position_embedding(x, pe, tile_l=16, small_bytes=0))
    assert out.dtype == jnp.float32
    assert jnp.allclose(out, ref, atol=1e-5), "case 4 mismatch"

    print("KERNEL_OK")
</pallas_src>

<mosaic_0001>
module attributes {stable_mosaic.version = 11 : i64} {
  func.func @_pos_embed_whole_kernel(%arg0: memref<2x8x32xf32, #tpu.memory_space<vmem>>, %arg1: memref<8x32xf32, #tpu.memory_space<vmem>>, %arg2: memref<2x8x32xf32, #tpu.memory_space<vmem>>) attributes {dimension_semantics = [], scalar_prefetch = 0 : i64, scratch_operands = 0 : i64, tpu.core_type = #tpu.core_type<tc>} {
    %c0 = arith.constant 0 : index
    %c0_0 = arith.constant 0 : index
    %c0_1 = arith.constant 0 : index
    %0 = vector.load %arg0[%c0, %c0_0, %c0_1] : memref<2x8x32xf32, #tpu.memory_space<vmem>>, vector<2x8x32xf32>
    %c0_2 = arith.constant 0 : index
    %c0_3 = arith.constant 0 : index
    %1 = vector.load %arg1[%c0_2, %c0_3] : memref<8x32xf32, #tpu.memory_space<vmem>>, vector<8x32xf32>
    %2 = vector.shape_cast %1 : vector<8x32xf32> to vector<1x8x32xf32>
    %3 = vector.broadcast %2 : vector<1x8x32xf32> to vector<2x8x32xf32>
    %4 = arith.addf %0, %3 : vector<2x8x32xf32>
    %c0_4 = arith.constant 0 : index
    %c0_5 = arith.constant 0 : index
    %c0_6 = arith.constant 0 : index
    %5 = vector.load %arg2[%c0_4, %c0_5, %c0_6] : memref<2x8x32xf32, #tpu.memory_space<vmem>>, vector<2x8x32xf32>
    tpu.vector_store %arg2[%c0_4, %c0_5, %c0_6], %4 {strides = array<i32>} : memref<2x8x32xf32, #tpu.memory_space<vmem>>, vector<2x8x32xf32>,
    return
  }
}

</mosaic_0001>

<bundles_post_ra>
// kernel: tpu_custom_call.1
= control target key start
LH: loop header
LB: loop body
LE: loop exit
PB: predicated region body
PF: predicated region fallthrough
CT: control target
= control target key end

     0   :  { %7 = vsyncpa [#allocation3], 0  ;;  %s203_s0 = inlined_call_operand.hbm [shape: f32[2,8,32], index: 0, kind: input, shape index: {}]   ;;  %s204_s1 = inlined_call_operand.hbm [shape: f32[8,32], index: 1, kind: input, shape index: {}]   ;;  %s205_s2 = inlined_call_operand.hbm [shape: f32[2,8,32], index: 2, kind: output, shape index: {}]  }
   0x1   :  { %8 = vsyncpa [#allocation6], 0 }
   0x2   :  { %9 = vsyncpa [#allocation4], 0  ;;  %s141_s9 = smov [#allocation2]   ;;  %s69_s13 = scalar_lea.hbm %s203_s0, 256 }
   0x3   :  { %s15_s10 = sshll.u32 %s141_s9, 4  ;;  %p70_p0 = scmp.ne.s32.totalorder %s203_s0, %s69_s13  ;;  %s16_s10 = int_to_ptr.vmem [resolvable:$true] %s15_s10 }
   0x4   :  { %p73_p1 = scmp.lt.u32.totalorder %s69_s13, %s203_s0 }
   0x6   :  { %p75_p2 = pnand %p73_p1, %p70_p0 }
   0x8   :  { %78 = shalt.err (!%p75_p2)
}
   0x9   :  { %s79_s18 = scalar_lea.vmem %s16_s10, 256  ;;  %p84_p4 = scmp.lt.s32.totalorder %s16_s10, %s16_s10 }
   0xa   :  { %p80_p3 = scmp.ne.s32.totalorder %s16_s10, %s79_s18  ;;  %p85_p5 = scmp.lt.s32.totalorder %s79_s18, %s79_s18 }
   0xc   :  { %p86_p6 = por %p85_p5, %p84_p4 }
   0xe   :  { %p87_p7 = pnand %p86_p6, %p80_p3 }
  0x10   :  { %90 = shalt.err (!%p87_p7)
}
  0x11   :  { %s142_s19 = smov 128   ;;  %s143_s20 = smov 8  }
  0x12   :  { %21 = dma.hbm_to_vmem [thread:$0]  %s203_s0, 256, %s16_s10, [#allocation3], %s142_s19, %s142_s19, %s143_s20  }
  0x13   :  { %s144_s23 = smov [#allocation5]   ;;  %s91_s27 = scalar_lea.hbm %s204_s1, 128 }
  0x14   :  { %s28_s24 = sshll.u32 %s144_s23, 4  ;;  %p92_p8 = scmp.ne.s32.totalorder %s204_s1, %s91_s27  ;;  %s29_s24 = int_to_ptr.vmem [resolvable:$true] %s28_s24 }
  0x15   :  { %p95_p9 = scmp.lt.u32.totalorder %s91_s27, %s204_s1 }
  0x17   :  { %p97_p10 = pnand %p95_p9, %p92_p8 }
  0x19   :  { %100 = shalt.err (!%p97_p10)
}
  0x1a   :  { %s101_s4 = scalar_lea.vmem %s29_s24, 128  ;;  %p106_p12 = scmp.lt.s32.totalorder %s29_s24, %s29_s24 }
  0x1b   :  { %p102_p11 = scmp.ne.s32.totalorder %s29_s24, %s101_s4  ;;  %p107_p13 = scmp.lt.s32.totalorder %s101_s4, %s101_s4 }
  0x1d   :  { %p108_p0 = por %p107_p13, %p106_p12 }
  0x1f   :  { %p109_p1 = pnand %p108_p0, %p102_p11 }
  0x21   :  { %112 = shalt.err (!%p109_p1)
}
  0x22   :  { %31 = dma.hbm_to_vmem [thread:$0]  %s204_s1, 128, %s29_s24, [#allocation6]  }
  0x23   :  { %135 = dma.done.wait [#allocation3], 256  }
  0x24   :  { %136 = vsyncadd [#allocation3], 4294967040 }
  0x25   :  { %137 = dma.done.wait [#allocation6], 128  }
  0x26   :  { %138 = vsyncadd [#allocation6], 4294967168  ;;  %s145_s6 = smov [#allocation7]   ;;  %v38_v0 = vld [vmem:[#allocation2] sm:$0xff]  ;;  %v40_v1 = vld [vmem:[#allocation5] sm:$0xff]  ;;  %vm43_vm0 = vcmask 261120  }
  0x27   :  { %s51_s7 = sshll.u32 %s145_s6, 4  ;;  %v39_v2 = vld [vmem:[#allocation2 + $0x8] sm:$0xff]  ;;  %v41_v3 = vadd.f32 %v40_v1, %v38_v0  ;;  %s52_s7 = int_to_ptr.vmem [resolvable:$true] %s51_s7 }
  0x28   :  { %v42_v4 = vadd.f32 %v40_v1, %v39_v2  ;;  %s113_s8 = scalar_lea.vmem %s52_s7, 256  ;;  %p118_p3 = scmp.lt.s32.totalorder %s52_s7, %s52_s7 }
  0x29   :  { %44 = vst.msk [vmem:[#allocation7] sm:$0xff] %vm43_vm0, %v41_v3  ;;  %p114_p2 = scmp.ne.s32.totalorder %s52_s7, %s113_s8  ;;  %p119_p4 = scmp.lt.s32.totalorder %s113_s8, %s113_s8 }
  0x2a   :  { %45 = vst.msk [vmem:[#allocation7 + $0x8] sm:$0xff] %vm43_vm0, %v42_v4 }
  0x2b   :  { %p120_p5 = por %p119_p4, %p118_p3 }
  0x2d   :  { %p121_p6 = pnand %p120_p5, %p114_p2 }
  0x2f   :  { %124 = shalt.err (!%p121_p6)
}
  0x30   :  { %s125_s10 = scalar_lea.hbm %s205_s2, 256 }
  0x31   :  { %p126_p7 = scmp.ne.s32.totalorder %s205_s2, %s125_s10  ;;  %p129_p8 = scmp.lt.u32.totalorder %s125_s10, %s205_s2 }
  0x33   :  { %p131_p9 = pnand %p129_p8, %p126_p7 }
  0x35   :  { %134 = shalt.err (!%p131_p9)
}
  0x36   :  { %57 = dma.vmem_to_hbm [thread:$0]  %s52_s7, 256, %s205_s2, [#allocation4], %s142_s19, %s142_s19, %s143_s20  }
  0x37   :  { %139 = dma.done.wait [#allocation4], 256  }
  0x38   :  { %140 = vsyncadd [#allocation4], 4294967040 }
  0x39   :  { %61 = vsyncpa [#allocation3], 1 }
  0x3a   :  { %62 = vsyncpa [#allocation6], 1 }
  0x3b   :  { %63 = vsyncpa [#allocation4], 1 }

</bundles_post_ra>
